<compile_context>
chip_gen: v5e
topology: v5e:2x2
jax: 0.10.0
libtpu: 0.0.40
codegen_flags: <defaults>
</compile_context>

<pallas_src>
import jax
import jax.numpy as jnp
from jax.experimental import pallas as pl
from jax.experimental.pallas import tpu as pltpu


def _cdiv(a, b):
    return -(-a // b)


def _round_up(x, m):
    return _cdiv(x, m) * m


def _divisors(n):
    return sorted({d for i in range(1, int(n ** 0.5) + 1) if n % i == 0 for d in (i, n // i)})


def _make_kernel(n_chunk, n_chunks, tile_rows, strip):
    n_full = tile_rows // strip
    rem = tile_rows - n_full * strip

    def kernel(img_ref, adv_ref, out_ref):
        # img_ref/out_ref: (tile_rows, lanes); adv_ref: (n_chunk, tile_rows, lanes).

        def apply_strip(src_ref, r0, nrows):
            acc = src_ref[pl.ds(r0, nrows), :]
            for n in range(n_chunk):              # unrolled: acc stays in vregs
                adv = adv_ref[n, pl.ds(r0, nrows), :]
                acc = jnp.where(adv == 0, acc, adv)
            out_ref[pl.ds(r0, nrows), :] = acc

        def sweep(src_ref):
            if 0 < n_full <= 4:                   # short: static unroll
                for s in range(n_full):
                    apply_strip(src_ref, s * strip, strip)
            elif n_full > 4:
                def body(s, carry):
                    apply_strip(src_ref, pl.multiple_of(s * strip, strip), strip)
                    return carry
                jax.lax.fori_loop(0, n_full, body, 0)
            if rem:
                apply_strip(src_ref, n_full * strip, rem)

        if n_chunks == 1:
            sweep(img_ref)                        # single chunk: read img, write out
        else:
            c = pl.program_id(2)

            @pl.when(c == 0)                      # seed the resident out tile from img
            def _():
                sweep(img_ref)

            @pl.when(c != 0)                      # update the resident out tile
            def _():
                sweep(out_ref)

    return kernel


def _choose_layout(chw, batch, itemsize, sublane, n_chunk, budget_bytes, max_lanes):
    """Pick (lanes, rows, tile_rows, num_row_tiles, chw_pad).

    Preference: (1) >=2 parallel tiles total (v7x megacore), (2) blocks up to ~512 KiB
    (amortize per-step overhead), (3) exact row division (no wasted boundary-tile DMA),
    (4) bigger blocks, (5) wider lanes.  Lanes is always a multiple of 128 -> unmasked vst.
    """
    buf_factor = itemsize * (2 * n_chunk + 4)     # double-buffered adv chunk + img + out

    lane_cands = [l for l in range(128, max_lanes + 1, 128) if chw % l == 0]
    needs_pad = not lane_cands
    if needs_pad:
        lane_cands = [128]

    best, best_key = None, None
    for lanes in lane_cands:
        rows = _cdiv(chw, lanes)
        budget_rows = max(1, budget_bytes // (lanes * buf_factor))
        aligned_budget = max(sublane, budget_rows // sublane * sublane)
        cands = []
        if needs_pad:
            # Arrays get padded/copied anyway -> force an exact, sublane-friendly tiling.
            if rows <= budget_rows:
                cands.append((rows, 1))
                if batch == 1 and rows >= 2 * sublane:
                    t = _round_up(_cdiv(rows, 2), sublane)
                    cands.append((t, _cdiv(rows, t)))
            else:
                nt = _cdiv(rows, aligned_budget)
                t = _round_up(_cdiv(rows, nt), sublane)
                cands.append((t, _cdiv(rows, t)))
        else:
            for t in _divisors(rows):
                if t <= budget_rows and (t % sublane == 0 or t == rows):
                    cands.append((t, rows // t))
            if rows > budget_rows:                # ragged fallback (boundary tile masked)
                nt = _cdiv(rows, aligned_budget)
                t = _round_up(_cdiv(rows, nt), sublane)
                cands.append((t, _cdiv(rows, t)))
            if batch == 1 and rows >= 2 * sublane:   # give both v7x cores a row tile
                t = _round_up(_cdiv(rows, 2), sublane)
                if t <= budget_rows:
                    cands.append((t, _cdiv(rows, t)))
        for t, nt in cands:
            exact = needs_pad or (t * nt == rows)
            tile_bytes = t * lanes * itemsize
            key = (min(batch * nt, 2),
                   min(tile_bytes, 512 * 1024) // (128 * 1024),
                   exact, t * lanes, lanes)
            if best_key is None or key > best_key:
                best_key, best = key, (lanes, rows, t, nt)

    lanes, rows, tile_rows, num_row_tiles = best
    if needs_pad:
        rows = tile_rows * num_row_tiles
    chw_pad = (rows * lanes) if needs_pad else chw
    return lanes, rows, tile_rows, num_row_tiles, chw_pad


def patch_applier(img_batch, adv_batch, *, max_n_chunk=8, max_lanes=2048,
                  vmem_budget_bytes=24 * 1024 * 1024):
    """PatchApplier.forward: apply all adversarial patches to the image batch.

    img_batch: (B, C, H, W); adv_batch: (B, N, C, H, W) -> (B, C, H, W).
    vmem_budget_bytes bounds the double-buffered block working set; the 24 MiB default
    is safe on every generation (v5e/v6e: 128 MiB, v7x: 64 MiB physical VMEM per TC).
    """
    B, C, H, W = img_batch.shape
    assert adv_batch.shape[0] == B and adv_batch.shape[2:] == (C, H, W), adv_batch.shape
    N = adv_batch.shape[1]
    if N == 0:
        return img_batch

    dtype = img_batch.dtype
    adv_batch = adv_batch.astype(dtype)
    itemsize = jnp.dtype(dtype).itemsize
    sublane = max(8, 32 // itemsize)              # 8 f32 / 16 bf16 / 32 int8-fp8
    chw = C * H * W

    # Patch-axis chunking: largest divisor of N <= max_n_chunk (no padded zero patches).
    n_chunk = 1
    for d in range(2, min(N, max_n_chunk) + 1):
        if N % d == 0:
            n_chunk = d
    n_chunks = N // n_chunk

    lanes, rows, tile_rows, num_row_tiles, chw_pad = _choose_layout(
        chw, B, itemsize, sublane, n_chunk, vmem_budget_bytes, max_lanes)
    strip = min(sublane, tile_rows)

    padded = chw_pad != chw
    if padded:
        # Rare fallback (C*H*W not a multiple of 128): materializes a padded copy of
        # adv once.  The common path below is a pure (free) reshape, zero extra traffic.
        img_flat = jnp.pad(img_batch.reshape(B, chw), ((0, 0), (0, chw_pad - chw)))
        adv_flat = jnp.pad(adv_batch.reshape(B, N, chw),
                           ((0, 0), (0, 0), (0, chw_pad - chw)))
    else:
        img_flat = img_batch.reshape(B, chw)
        adv_flat = adv_batch.reshape(B, N, chw)
    img_flat = img_flat.reshape(B, rows, lanes)
    adv_flat = adv_flat.reshape(B, N, rows, lanes)

    footprint = (2 * n_chunk + 4) * tile_rows * lanes * itemsize
    vmem_limit = int(min(footprint + (16 << 20), 48 << 20))

    kernel = _make_kernel(n_chunk, n_chunks, tile_rows, strip)

    out_flat = pl.pallas_call(
        kernel,
        out_shape=jax.ShapeDtypeStruct((B, rows, lanes), dtype),
        grid_spec=pl.GridSpec(
            grid=(B, num_row_tiles, n_chunks),
            in_specs=[
                # Image tile: constant over the chunk axis -> fetched once per (b, r).
                pl.BlockSpec((None, tile_rows, lanes), lambda b, r, c: (b, r, 0)),
                # Chunk of patches for this (b, r) tile, straight out of the native
                # (B, N, rows, lanes) layout -- no host-side transpose of adv.
                pl.BlockSpec((None, n_chunk, tile_rows, lanes),
                             lambda b, r, c: (b, c, r, 0)),
            ],
            # Output indexed only by (b, r): VMEM-resident running image across chunks.
            out_specs=pl.BlockSpec((None, tile_rows, lanes), lambda b, r, c: (b, r, 0)),
        ),
        compiler_params=pltpu.CompilerParams(
            dimension_semantics=("parallel", "parallel", "arbitrary"),
            vmem_limit_bytes=vmem_limit,
        ),
        cost_estimate=pl.CostEstimate(
            flops=2 * B * N * chw,
            transcendentals=0,
            bytes_accessed=(N + 2) * B * chw * itemsize,
        ),
        # Alias only when img_flat is a freshly materialized (padded) temporary;
        # aliasing the caller's live img_batch would force a defensive copy instead.
        input_output_aliases={0: 0} if padded else {},
    )(img_flat, adv_flat)

    if padded:
        out_flat = out_flat.reshape(B, chw_pad)[:, :chw]
    return out_flat.reshape(B, C, H, W)


def patch_applier_ref(img_batch, adv_batch):
    """Pure-JAX reference matching the PyTorch forward exactly."""
    out = img_batch
    for n in range(adv_batch.shape[1]):
        adv = adv_batch[:, n]
        out = jnp.where(adv == 0, out, adv)
    return out


def _make_inputs(key, B, N, C, H, W):
    k_img, k_adv, k_mask = jax.random.split(key, 3)
    img = jax.random.uniform(k_img, (B, C, H, W), dtype=jnp.float32)
    adv_vals = jax.random.uniform(k_adv, (B, N, C, H, W), dtype=jnp.float32)
    mask = jax.random.uniform(k_mask, (B, N, 1, H, W)) > 0.6   # ~60% zeros (patch padding)
    adv = jnp.where(mask, adv_vals, 0.0).astype(jnp.float32)
    return img, adv


if __name__ == "__main__":
    key = jax.random.PRNGKey(0)
    run = jax.jit(patch_applier,
                  static_argnames=("max_n_chunk", "max_lanes", "vmem_budget_bytes"))

    # 1) Main small config (single chunk, single row tile, lanes == C*H*W, no padding).
    img, adv = _make_inputs(key, B=2, N=4, C=3, H=16, W=16)
    out = jax.block_until_ready(run(img, adv))
    assert out.shape == img.shape
    assert jnp.allclose(out, patch_applier_ref(img, adv)), "mismatch (config 1)"

    # 2) Multi-chunk + multi-row-tile + strip fori_loop path (forced small tiles).
    img2, adv2 = _make_inputs(jax.random.fold_in(key, 1), B=1, N=6, C=4, H=64, W=64)
    out2 = jax.block_until_ready(
        run(img2, adv2, max_n_chunk=2, max_lanes=128, vmem_budget_bytes=256 * 1024))
    assert jnp.allclose(out2, patch_applier_ref(img2, adv2)), "mismatch (config 2)"

    # 3) Fallback path: C*H*W not a multiple of 128 (padded + aliased output).
    img3, adv3 = _make_inputs(jax.random.fold_in(key, 2), B=2, N=3, C=3, H=20, W=20)
    out3 = jax.block_until_ready(run(img3, adv3))
    assert jnp.allclose(out3, patch_applier_ref(img3, adv3)), "mismatch (config 3)"

    print("KERNEL_OK")
</pallas_src>

<mosaic_0001>
module attributes {stable_mosaic.version = 11 : i64} {
  func.func @kernel(%arg0: i32, %arg1: i32, %arg2: i32, %arg3: memref<1x1x768xf32, #tpu.memory_space<vmem>>, %arg4: memref<1x4x1x768xf32, #tpu.memory_space<vmem>>, %arg5: memref<1x1x768xf32, #tpu.memory_space<vmem>>) attributes {dimension_semantics = [#tpu.dimension_semantics<parallel>, #tpu.dimension_semantics<parallel>, #tpu.dimension_semantics<arbitrary>], iteration_bounds = array<i64: 2, 1, 1>, scalar_prefetch = 0 : i64, scratch_operands = 0 : i64, tpu.core_type = #tpu.core_type<tc>, window_params = [{transform_indices = @transform_0, window_bounds = array<i64: 1, 1, 768>}, {transform_indices = @transform_1, window_bounds = array<i64: 1, 4, 1, 768>}, {transform_indices = @transform_2, window_bounds = array<i64: 1, 1, 768>}]} {
    %c0 = arith.constant 0 : index
    %c0_0 = arith.constant 0 : index
    %c0_1 = arith.constant 0 : index
    %0 = vector.load %arg3[%c0, %c0_0, %c0_1] : memref<1x1x768xf32, #tpu.memory_space<vmem>>, vector<1x1x768xf32>
    %1 = vector.shape_cast %0 : vector<1x1x768xf32> to vector<1x768xf32>
    %c0_2 = arith.constant 0 : index
    %c0_3 = arith.constant 0 : index
    %c0_4 = arith.constant 0 : index
    %c0_5 = arith.constant 0 : index
    %2 = vector.load %arg4[%c0_2, %c0_3, %c0_4, %c0_5] : memref<1x4x1x768xf32, #tpu.memory_space<vmem>>, vector<1x1x1x768xf32>
    %3 = vector.shape_cast %2 : vector<1x1x1x768xf32> to vector<1x768xf32>
    %cst = arith.constant 0.000000e+00 : f32
    %4 = vector.broadcast %cst : f32 to vector<1x768xf32>
    %5 = arith.cmpf oeq, %3, %4 : vector<1x768xf32>
    %6 = arith.select %5, %1, %3 : vector<1x768xi1>, vector<1x768xf32>
    %c0_6 = arith.constant 0 : index
    %c1 = arith.constant 1 : index
    %c0_7 = arith.constant 0 : index
    %c0_8 = arith.constant 0 : index
    %7 = vector.load %arg4[%c0_6, %c1, %c0_7, %c0_8] : memref<1x4x1x768xf32, #tpu.memory_space<vmem>>, vector<1x1x1x768xf32>
    %8 = vector.shape_cast %7 : vector<1x1x1x768xf32> to vector<1x768xf32>
    %cst_9 = arith.constant 0.000000e+00 : f32
    %9 = vector.broadcast %cst_9 : f32 to vector<1x768xf32>
    %10 = arith.cmpf oeq, %8, %9 : vector<1x768xf32>
    %11 = arith.select %10, %6, %8 : vector<1x768xi1>, vector<1x768xf32>
    %c0_10 = arith.constant 0 : index
    %c2 = arith.constant 2 : index
    %c0_11 = arith.constant 0 : index
    %c0_12 = arith.constant 0 : index
    %12 = vector.load %arg4[%c0_10, %c2, %c0_11, %c0_12] : memref<1x4x1x768xf32, #tpu.memory_space<vmem>>, vector<1x1x1x768xf32>
    %13 = vector.shape_cast %12 : vector<1x1x1x768xf32> to vector<1x768xf32>
    %cst_13 = arith.constant 0.000000e+00 : f32
    %14 = vector.broadcast %cst_13 : f32 to vector<1x768xf32>
    %15 = arith.cmpf oeq, %13, %14 : vector<1x768xf32>
    %16 = arith.select %15, %11, %13 : vector<1x768xi1>, vector<1x768xf32>
    %c0_14 = arith.constant 0 : index
    %c3 = arith.constant 3 : index
    %c0_15 = arith.constant 0 : index
    %c0_16 = arith.constant 0 : index
    %17 = vector.load %arg4[%c0_14, %c3, %c0_15, %c0_16] : memref<1x4x1x768xf32, #tpu.memory_space<vmem>>, vector<1x1x1x768xf32>
    %18 = vector.shape_cast %17 : vector<1x1x1x768xf32> to vector<1x768xf32>
    %cst_17 = arith.constant 0.000000e+00 : f32
    %19 = vector.broadcast %cst_17 : f32 to vector<1x768xf32>
    %20 = arith.cmpf oeq, %18, %19 : vector<1x768xf32>
    %21 = arith.select %20, %16, %18 : vector<1x768xi1>, vector<1x768xf32>
    %c0_18 = arith.constant 0 : index
    %c0_19 = arith.constant 0 : index
    %c0_20 = arith.constant 0 : index
    %22 = vector.load %arg5[%c0_18, %c0_19, %c0_20] : memref<1x1x768xf32, #tpu.memory_space<vmem>>, vector<1x1x768xf32>
    %23 = vector.shape_cast %22 : vector<1x1x768xf32> to vector<1x768xf32>
    %24 = vector.shape_cast %21 : vector<1x768xf32> to vector<1x1x768xf32>
    tpu.vector_store %arg5[%c0_18, %c0_19, %c0_20], %24 {strides = array<i32>} : memref<1x1x768xf32, #tpu.memory_space<vmem>>, vector<1x1x768xf32>,
    return
  }
  func.func @transform_0(%arg0: i32, %arg1: i32, %arg2: i32) -> (i32, i32, i32) {
    %c0_i32 = arith.constant 0 : i32
    %c0_i32_0 = arith.constant 0 : i32
    return %arg0, %arg1, %c0_i32 : i32, i32, i32
  }
  func.func @transform_1(%arg0: i32, %arg1: i32, %arg2: i32) -> (i32, i32, i32, i32) {
    %c0_i32 = arith.constant 0 : i32
    %c0_i32_0 = arith.constant 0 : i32
    return %arg0, %arg2, %arg1, %c0_i32 : i32, i32, i32, i32
  }
  func.func @transform_2(%arg0: i32, %arg1: i32, %arg2: i32) -> (i32, i32, i32) {
    %c0_i32 = arith.constant 0 : i32
    %c0_i32_0 = arith.constant 0 : i32
    return %arg0, %arg1, %c0_i32 : i32, i32, i32
  }
}

</mosaic_0001>

<bundles_post_ra>
// kernel: patch_applier.1
= control target key start
LH: loop header
LB: loop body
LE: loop exit
PB: predicated region body
PF: predicated region fallthrough
CT: control target
= control target key end

     0   :  { %s438_s9 = smov 0   ;;  %s440_s10 = smov 0   ;;  %s474_s0 = inlined_call_operand.vmem [shape: f32[2,1,768], index: 0, kind: input, shape index: {}]   ;;  %s475_s1 = inlined_call_operand.vmem [shape: f32[2,4,1,768], index: 1, kind: input, shape index: {}]   ;;  %s476_s2 = inlined_call_operand.vmem [shape: f32[2,1,768], index: 2, kind: output, shape index: {}]  }
   0x1   :  { %s442_s11 = smov 0  }
   0x2 LB: > { %s31_s12 = sadd.s32 1, %s417_s10  ;;  %p367_p0 = scmp.ge.s32.totalorder %s421_s11, 1  ;;  %s421_s11 = sphi %s442_s11, %s12_s11   ;;  %s417_s10 = sphi %s440_s10, %s478_s10   ;;  %s413_s9 = sphi %s438_s9, %s477_s9  }
   0x3   : > { %p33_p1 = scmp.ge.s32.totalorder %s31_s12, 2  ;;  %p161_p2 = scmp.lt.s32.totalorder %s421_s11, 3 }
   0x5   : > { %s480_s12 = smov (%p33_p1, %s31_s12), 0  ;;  %p162_p3 = pnand %p367_p0, %p161_p2 }
   0x6   : > { %p202_p4 = scmp.lt.s32.totalorder (!%p162_p3), %s413_s9, 1 }
   0x7   : > { %165 = sbr.rel (%p162_p3) target bundleno = 24 (0x18), region = 28 }
   0xc   : > { %s482_s9 = smov (!%p202_p4, %s413_s9), 1  ;;  %v248_v1 = vlaneseq }
   0xd   : > { %s373_s13 = smul.u32 6, %s482_s9 }
   0xe   : > { %s374_s14 = smul.u32 24, %s482_s9  ;;  %vm250_vm4 = vcmp.lt.s32.totalorder %v248_v1, 768 }
   0xf   : > { %s209_s17 = scalar_lea.vmem %s474_s0, %s373_s13  ;;  %s231_s23 = scalar_lea.vmem %s476_s2, %s373_s13 }
  0x10   : > { %s222_s20 = scalar_lea.vmem %s475_s1, %s374_s14  ;;  %v232_v0 = vld [vmem:[%s209_s17] sm:$0x3f] }
  0x11   : > { %v233_v2 = vld [vmem:[%s222_s20] sm:$0x3f]  ;;  %v368_v3 = vld [vmem:[%s222_s20 + $0x6] sm:$0x3f]  ;;  %v369_v4 = vld [vmem:[%s222_s20 + $0xc] sm:$0x3f] }
  0x12   : > { %vm234_vm0 = vcmp.eq.f32.partialorder %v233_v2, 0.0  ;;  %vm238_vm1 = vcmp.eq.f32.partialorder %v368_v3, 0.0  ;;  %vm242_vm2 = vcmp.eq.f32.partialorder %v369_v4, 0.0  ;;  %v370_v5 = vld [vmem:[%s222_s20 + $0x12] sm:$0x3f] }
  0x13   : > { %v235_v6 = vsel %vm234_vm0, %v232_v0, %v233_v2  ;;  %vm246_vm3 = vcmp.eq.f32.partialorder %v370_v5, 0.0 }
  0x14   : > { %v239_v7 = vsel %vm238_vm1, %v235_v6, %v368_v3 }
  0x15   : > { %v243_v8 = vsel %vm242_vm2, %v239_v7, %v369_v4 }
  0x16   : > { %v247_v9 = vsel %vm246_vm3, %v243_v8, %v370_v5 }
  0x17   : > { %252 = vst.msk [vmem:[%s231_s23] sm:$0x3f] %vm250_vm4, %v247_v9 }
  0x18 PF: > { %s12_s11 = sadd.s32 1, %s421_s11   ;;  %s477_s9 = smov %s417_s10 }
  0x19   : > { %p9_p5 = scmp.ge.s32.totalorder %s12_s11, 4   ;;  %s478_s10 = smov %s480_s12 }
  0x1b   :  { %11 = sbr.rel (!%p9_p5) target bundleno = 2 (0x2), region = 64 }

</bundles_post_ra>
